<compile_context>
chip_gen: v5e
topology: v5e:2x2
jax: 0.10.0
libtpu: 0.0.40
codegen_flags: <defaults>
</compile_context>

<pallas_src>
import jax
import jax.numpy as jnp
from jax.experimental import pallas as pl
from jax.experimental.pallas import tpu as pltpu


# ------------------------------ fused kernel --------------------------------

def _convnet_kernel(x_ref, p_ref, wfc_ref, bfc_ref, o_ref):
    # x_ref  : (TB, 1024) lanes = e*512 + f*256 + c*128 + d*64 + a*32 + b*16 + i*4 + j
    #          (padded H = 8i+4a+2c+e, padded W = 8j+4b+2d+f)
    # p_ref  : SMEM f32[32] = [w1(4) | b1(1) | w2(4) | b2(1) | w3(16) | b3(4) | pad(2)]
    # wfc_ref: (64, 10) pre-transposed fc1 weight (rows in flatten order)
    # bfc_ref: (1, 10)
    # o_ref  : (TB, 10)
    x = x_ref[...]

    # ---- conv1 (1->1, k2 s2, pad=2 pre-applied) + ReLU : VPU broadcast-FMAs ----
    y1 = (p_ref[0] * x[:, 0:256] + p_ref[1] * x[:, 256:512]
          + p_ref[2] * x[:, 512:768] + p_ref[3] * x[:, 768:1024]
          + p_ref[4])
    y1 = jnp.maximum(y1, 0.0)                        # (TB, 256), lanes = c d a b i j

    # ---- conv2 (1->1, k2 s2) + ReLU : contract the (c,d) lane chunks -----------
    y2 = (p_ref[5] * y1[:, 0:64] + p_ref[6] * y1[:, 64:128]
          + p_ref[7] * y1[:, 128:192] + p_ref[8] * y1[:, 192:256]
          + p_ref[9])
    y2 = jnp.maximum(y2, 0.0)                        # (TB, 64), lanes = a b i j

    # ---- conv3 (1->4, k2 s2) + ReLU, assembled into one (TB,64) flatten slab ---
    chans = []
    for o in range(4):                               # unrolled at trace time
        w = 10 + 4 * o
        y3o = (p_ref[w + 0] * y2[:, 0:16] + p_ref[w + 1] * y2[:, 16:32]
               + p_ref[w + 2] * y2[:, 32:48] + p_ref[w + 3] * y2[:, 48:64]
               + p_ref[26 + o])
        chans.append(jnp.maximum(y3o, 0.0))          # (TB, 16): channel o, lane = h*4+w
    y3 = jnp.concatenate(chans, axis=-1)             # (TB, 64), lane = o*16 + h*4 + w

    # ---- fc1: a single batched MXU matmul + bias -------------------------------
    logits = jnp.dot(y3, wfc_ref[...], preferred_element_type=jnp.float32) + bfc_ref[...]

    # ---- softmax(dim=-1), numerically stable; divide on the (idle) EUP ---------
    m = jnp.max(logits, axis=-1, keepdims=True)
    e = jnp.exp(logits - m)
    s = jnp.sum(e, axis=-1, keepdims=True)
    o_ref[...] = (e * pl.reciprocal(s, approx=False)).astype(o_ref.dtype)


# -------------------------------- wrapper -----------------------------------

def convnet_forward(x, params, tb=None):
    B, C, H, W = x.shape
    assert C == 1 and H == 28 and W == 28, "fc1=Linear(64,10) fixes input to (B,1,28,28)"

    # Boundary layout prep (one XLA fusion on the input path): pad + hierarchical
    # space-to-depth.  Padded H = 8i+4a+2c+e, W = 8j+4b+2d+f.
    xp = jnp.pad(x[:, 0].astype(jnp.float32), ((0, 0), (2, 2), (2, 2)))   # (B, 32, 32)
    xp = xp.reshape(B, 4, 2, 2, 2, 4, 2, 2, 2)            # (B, i,a,c,e, j,b,d,f)
    xp = xp.transpose(0, 4, 8, 3, 7, 2, 6, 1, 5)          # (B, e,f, c,d, a,b, i,j)
    x1 = xp.reshape(B, 1024)                              # lane-dense: 1 row / image

    # Tile size: sublane-aligned, <= 512 rows (2 MiB/block, 4 MiB double-buffered
    # -> safe in v7x's 32 MiB scoped VMEM), and >= 2 grid steps for large B so
    # both v7x TensorCores get work.
    if tb is None:
        tb = min(512, max(8, pl.cdiv(B, 2)))
        tb = 8 * pl.cdiv(tb, 8)
    n_blk = pl.cdiv(B, tb)
    b_pad = n_blk * tb
    if b_pad != B:
        x1 = jnp.pad(x1, ((0, b_pad - B), (0, 0)))        # zero tail rows (masked off below)

    # Pack all conv scalars into one SMEM f32[32] operand (static offsets in-kernel).
    p = jnp.concatenate([
        params["w1"].reshape(4).astype(jnp.float32),
        params["b1"].reshape(1).astype(jnp.float32),
        params["w2"].reshape(4).astype(jnp.float32),
        params["b2"].reshape(1).astype(jnp.float32),
        params["w3"].reshape(16).astype(jnp.float32),
        params["b3"].reshape(4).astype(jnp.float32),
        jnp.zeros((2,), jnp.float32),
    ])

    wfc_t = params["wfc"].T.astype(jnp.float32)           # (64, 10): no in-kernel .T
    bfc = params["bfc"].reshape(1, 10).astype(jnp.float32)

    out = pl.pallas_call(
        _convnet_kernel,
        out_shape=jax.ShapeDtypeStruct((b_pad, 10), jnp.float32),
        grid=(n_blk,),
        in_specs=[
            pl.BlockSpec((tb, 1024), lambda b: (b, 0)),                  # image slab
            pl.BlockSpec(memory_space=pltpu.MemorySpace.SMEM),           # packed scalars
            pl.BlockSpec((64, 10), lambda b: (0, 0)),                    # fc1 weight (K, O)
            pl.BlockSpec((1, 10), lambda b: (0, 0)),                     # fc1 bias
        ],
        out_specs=pl.BlockSpec((tb, 10), lambda b: (b, 0)),
        compiler_params=pltpu.CompilerParams(
            dimension_semantics=("parallel",)),                          # v7x: 2 TCs fed
    )(x1, p, wfc_t, bfc)
    return out[:B]


# ------------------------- pure-JAX reference check --------------------------

def _ref_forward(x, p):
    def conv(x, w, b, pad):
        y = jax.lax.conv_general_dilated(
            x, w, window_strides=(2, 2), padding=((pad, pad), (pad, pad)),
            dimension_numbers=("NCHW", "OIHW", "NCHW"))
        return jax.nn.relu(y + b.reshape(1, -1, 1, 1))
    x = conv(x, p["w1"], p["b1"], 2)
    x = conv(x, p["w2"], p["b2"], 0)
    x = conv(x, p["w3"], p["b3"], 0)
    x = x.reshape(x.shape[0], -1)
    return jax.nn.softmax(x @ p["wfc"].T + p["bfc"], axis=-1)


# ---------------------------------- main -------------------------------------

if __name__ == "__main__":
    key = jax.random.PRNGKey(0)
    kx, k1, k2, k3, k4, k5, k6, k7, k8 = jax.random.split(key, 9)

    # 28x28 single-channel input: the only spatial size compatible with
    # fc1 = Linear(64, 10) after the three stride-2 convs.
    x = jax.random.normal(kx, (2, 1, 28, 28), dtype=jnp.float32)

    params = {
        "w1": 0.5 * jax.random.normal(k1, (1, 1, 2, 2), dtype=jnp.float32),
        "b1": 0.1 * jax.random.normal(k2, (1,), dtype=jnp.float32),
        "w2": 0.5 * jax.random.normal(k3, (1, 1, 2, 2), dtype=jnp.float32),
        "b2": 0.1 * jax.random.normal(k4, (1,), dtype=jnp.float32),
        "w3": 0.5 * jax.random.normal(k5, (4, 1, 2, 2), dtype=jnp.float32),
        "b3": 0.1 * jax.random.normal(k6, (4,), dtype=jnp.float32),
        "wfc": 0.1 * jax.random.normal(k7, (10, 64), dtype=jnp.float32),
        "bfc": 0.1 * jax.random.normal(k8, (10,), dtype=jnp.float32),
    }

    out = jax.block_until_ready(convnet_forward(x, params))
    ref = jax.block_until_ready(_ref_forward(x, params))

    assert out.shape == (2, 10), out.shape
    assert jnp.allclose(out, ref, atol=1e-5, rtol=1e-5), (out, ref)
    print("KERNEL_OK")
</pallas_src>

<mosaic_0001>
module attributes {stable_mosaic.version = 11 : i64} {
  func.func @_convnet_kernel(%arg0: i32, %arg1: memref<8x1024xf32, #tpu.memory_space<vmem>>, %arg2: memref<32xf32, #tpu.memory_space<smem>>, %arg3: memref<64x10xf32, #tpu.memory_space<vmem>>, %arg4: memref<1x10xf32, #tpu.memory_space<vmem>>, %arg5: memref<8x10xf32, #tpu.memory_space<vmem>>) attributes {dimension_semantics = [#tpu.dimension_semantics<parallel>], iteration_bounds = array<i64: 1>, scalar_prefetch = 0 : i64, scratch_operands = 0 : i64, tpu.core_type = #tpu.core_type<tc>, window_params = [{transform_indices = @transform_0, window_bounds = array<i64: 8, 1024>}, {transform_indices = @transform_1, window_bounds = array<i64: 32>}, {pipeline_mode = #tpu.pipeline_mode<synchronous>, transform_indices = @transform_2, window_bounds = array<i64: 64, 10>}, {pipeline_mode = #tpu.pipeline_mode<synchronous>, transform_indices = @transform_3, window_bounds = array<i64: 1, 10>}, {transform_indices = @transform_4, window_bounds = array<i64: 8, 10>}]} {
    %c0 = arith.constant 0 : index
    %c0_0 = arith.constant 0 : index
    %0 = vector.load %arg1[%c0, %c0_0] : memref<8x1024xf32, #tpu.memory_space<vmem>>, vector<8x1024xf32>
    %c0_1 = arith.constant 0 : index
    %1 = memref.load %arg2[%c0_1] : memref<32xf32, #tpu.memory_space<smem>>
    %2 = vector.extract_strided_slice %0 {offsets = [0, 0], sizes = [8, 256], strides = [1, 1]} : vector<8x1024xf32> to vector<8x256xf32>
    %3 = vector.broadcast %1 : f32 to vector<8x256xf32>
    %4 = arith.mulf %3, %2 : vector<8x256xf32>
    %c1 = arith.constant 1 : index
    %5 = memref.load %arg2[%c1] : memref<32xf32, #tpu.memory_space<smem>>
    %6 = vector.extract_strided_slice %0 {offsets = [0, 256], sizes = [8, 256], strides = [1, 1]} : vector<8x1024xf32> to vector<8x256xf32>
    %7 = vector.broadcast %5 : f32 to vector<8x256xf32>
    %8 = arith.mulf %7, %6 : vector<8x256xf32>
    %9 = arith.addf %4, %8 : vector<8x256xf32>
    %c2 = arith.constant 2 : index
    %10 = memref.load %arg2[%c2] : memref<32xf32, #tpu.memory_space<smem>>
    %11 = vector.extract_strided_slice %0 {offsets = [0, 512], sizes = [8, 256], strides = [1, 1]} : vector<8x1024xf32> to vector<8x256xf32>
    %12 = vector.broadcast %10 : f32 to vector<8x256xf32>
    %13 = arith.mulf %12, %11 : vector<8x256xf32>
    %14 = arith.addf %9, %13 : vector<8x256xf32>
    %c3 = arith.constant 3 : index
    %15 = memref.load %arg2[%c3] : memref<32xf32, #tpu.memory_space<smem>>
    %16 = vector.extract_strided_slice %0 {offsets = [0, 768], sizes = [8, 256], strides = [1, 1]} : vector<8x1024xf32> to vector<8x256xf32>
    %17 = vector.broadcast %15 : f32 to vector<8x256xf32>
    %18 = arith.mulf %17, %16 : vector<8x256xf32>
    %19 = arith.addf %14, %18 : vector<8x256xf32>
    %c4 = arith.constant 4 : index
    %20 = memref.load %arg2[%c4] : memref<32xf32, #tpu.memory_space<smem>>
    %21 = vector.broadcast %20 : f32 to vector<8x256xf32>
    %22 = arith.addf %19, %21 : vector<8x256xf32>
    %cst = arith.constant 0.000000e+00 : f32
    %23 = vector.broadcast %cst : f32 to vector<8x256xf32>
    %24 = arith.maximumf %22, %23 : vector<8x256xf32>
    %c5 = arith.constant 5 : index
    %25 = memref.load %arg2[%c5] : memref<32xf32, #tpu.memory_space<smem>>
    %26 = vector.extract_strided_slice %24 {offsets = [0, 0], sizes = [8, 64], strides = [1, 1]} : vector<8x256xf32> to vector<8x64xf32>
    %27 = vector.broadcast %25 : f32 to vector<8x64xf32>
    %28 = arith.mulf %27, %26 : vector<8x64xf32>
    %c6 = arith.constant 6 : index
    %29 = memref.load %arg2[%c6] : memref<32xf32, #tpu.memory_space<smem>>
    %30 = vector.extract_strided_slice %24 {offsets = [0, 64], sizes = [8, 64], strides = [1, 1]} : vector<8x256xf32> to vector<8x64xf32>
    %31 = vector.broadcast %29 : f32 to vector<8x64xf32>
    %32 = arith.mulf %31, %30 : vector<8x64xf32>
    %33 = arith.addf %28, %32 : vector<8x64xf32>
    %c7 = arith.constant 7 : index
    %34 = memref.load %arg2[%c7] : memref<32xf32, #tpu.memory_space<smem>>
    %35 = vector.extract_strided_slice %24 {offsets = [0, 128], sizes = [8, 64], strides = [1, 1]} : vector<8x256xf32> to vector<8x64xf32>
    %36 = vector.broadcast %34 : f32 to vector<8x64xf32>
    %37 = arith.mulf %36, %35 : vector<8x64xf32>
    %38 = arith.addf %33, %37 : vector<8x64xf32>
    %c8 = arith.constant 8 : index
    %39 = memref.load %arg2[%c8] : memref<32xf32, #tpu.memory_space<smem>>
    %40 = vector.extract_strided_slice %24 {offsets = [0, 192], sizes = [8, 64], strides = [1, 1]} : vector<8x256xf32> to vector<8x64xf32>
    %41 = vector.broadcast %39 : f32 to vector<8x64xf32>
    %42 = arith.mulf %41, %40 : vector<8x64xf32>
    %43 = arith.addf %38, %42 : vector<8x64xf32>
    %c9 = arith.constant 9 : index
    %44 = memref.load %arg2[%c9] : memref<32xf32, #tpu.memory_space<smem>>
    %45 = vector.broadcast %44 : f32 to vector<8x64xf32>
    %46 = arith.addf %43, %45 : vector<8x64xf32>
    %cst_2 = arith.constant 0.000000e+00 : f32
    %47 = vector.broadcast %cst_2 : f32 to vector<8x64xf32>
    %48 = arith.maximumf %46, %47 : vector<8x64xf32>
    %c10 = arith.constant 10 : index
    %49 = memref.load %arg2[%c10] : memref<32xf32, #tpu.memory_space<smem>>
    %50 = vector.extract_strided_slice %48 {offsets = [0, 0], sizes = [8, 16], strides = [1, 1]} : vector<8x64xf32> to vector<8x16xf32>
    %51 = vector.broadcast %49 : f32 to vector<8x16xf32>
    %52 = arith.mulf %51, %50 : vector<8x16xf32>
    %c11 = arith.constant 11 : index
    %53 = memref.load %arg2[%c11] : memref<32xf32, #tpu.memory_space<smem>>
    %54 = vector.extract_strided_slice %48 {offsets = [0, 16], sizes = [8, 16], strides = [1, 1]} : vector<8x64xf32> to vector<8x16xf32>
    %55 = vector.broadcast %53 : f32 to vector<8x16xf32>
    %56 = arith.mulf %55, %54 : vector<8x16xf32>
    %57 = arith.addf %52, %56 : vector<8x16xf32>
    %c12 = arith.constant 12 : index
    %58 = memref.load %arg2[%c12] : memref<32xf32, #tpu.memory_space<smem>>
    %59 = vector.extract_strided_slice %48 {offsets = [0, 32], sizes = [8, 16], strides = [1, 1]} : vector<8x64xf32> to vector<8x16xf32>
    %60 = vector.broadcast %58 : f32 to vector<8x16xf32>
    %61 = arith.mulf %60, %59 : vector<8x16xf32>
    %62 = arith.addf %57, %61 : vector<8x16xf32>
    %c13 = arith.constant 13 : index
    %63 = memref.load %arg2[%c13] : memref<32xf32, #tpu.memory_space<smem>>
    %64 = vector.extract_strided_slice %48 {offsets = [0, 48], sizes = [8, 16], strides = [1, 1]} : vector<8x64xf32> to vector<8x16xf32>
    %65 = vector.broadcast %63 : f32 to vector<8x16xf32>
    %66 = arith.mulf %65, %64 : vector<8x16xf32>
    %67 = arith.addf %62, %66 : vector<8x16xf32>
    %c26 = arith.constant 26 : index
    %68 = memref.load %arg2[%c26] : memref<32xf32, #tpu.memory_space<smem>>
    %69 = vector.broadcast %68 : f32 to vector<8x16xf32>
    %70 = arith.addf %67, %69 : vector<8x16xf32>
    %cst_3 = arith.constant 0.000000e+00 : f32
    %71 = vector.broadcast %cst_3 : f32 to vector<8x16xf32>
    %72 = arith.maximumf %70, %71 : vector<8x16xf32>
    %c14 = arith.constant 14 : index
    %73 = memref.load %arg2[%c14] : memref<32xf32, #tpu.memory_space<smem>>
    %74 = vector.extract_strided_slice %48 {offsets = [0, 0], sizes = [8, 16], strides = [1, 1]} : vector<8x64xf32> to vector<8x16xf32>
    %75 = vector.broadcast %73 : f32 to vector<8x16xf32>
    %76 = arith.mulf %75, %74 : vector<8x16xf32>
    %c15 = arith.constant 15 : index
    %77 = memref.load %arg2[%c15] : memref<32xf32, #tpu.memory_space<smem>>
    %78 = vector.extract_strided_slice %48 {offsets = [0, 16], sizes = [8, 16], strides = [1, 1]} : vector<8x64xf32> to vector<8x16xf32>
    %79 = vector.broadcast %77 : f32 to vector<8x16xf32>
    %80 = arith.mulf %79, %78 : vector<8x16xf32>
    %81 = arith.addf %76, %80 : vector<8x16xf32>
    %c16 = arith.constant 16 : index
    %82 = memref.load %arg2[%c16] : memref<32xf32, #tpu.memory_space<smem>>
    %83 = vector.extract_strided_slice %48 {offsets = [0, 32], sizes = [8, 16], strides = [1, 1]} : vector<8x64xf32> to vector<8x16xf32>
    %84 = vector.broadcast %82 : f32 to vector<8x16xf32>
    %85 = arith.mulf %84, %83 : vector<8x16xf32>
    %86 = arith.addf %81, %85 : vector<8x16xf32>
    %c17 = arith.constant 17 : index
    %87 = memref.load %arg2[%c17] : memref<32xf32, #tpu.memory_space<smem>>
    %88 = vector.extract_strided_slice %48 {offsets = [0, 48], sizes = [8, 16], strides = [1, 1]} : vector<8x64xf32> to vector<8x16xf32>
    %89 = vector.broadcast %87 : f32 to vector<8x16xf32>
    %90 = arith.mulf %89, %88 : vector<8x16xf32>
    %91 = arith.addf %86, %90 : vector<8x16xf32>
    %c27 = arith.constant 27 : index
    %92 = memref.load %arg2[%c27] : memref<32xf32, #tpu.memory_space<smem>>
    %93 = vector.broadcast %92 : f32 to vector<8x16xf32>
    %94 = arith.addf %91, %93 : vector<8x16xf32>
    %cst_4 = arith.constant 0.000000e+00 : f32
    %95 = vector.broadcast %cst_4 : f32 to vector<8x16xf32>
    %96 = arith.maximumf %94, %95 : vector<8x16xf32>
    %c18 = arith.constant 18 : index
    %97 = memref.load %arg2[%c18] : memref<32xf32, #tpu.memory_space<smem>>
    %98 = vector.extract_strided_slice %48 {offsets = [0, 0], sizes = [8, 16], strides = [1, 1]} : vector<8x64xf32> to vector<8x16xf32>
    %99 = vector.broadcast %97 : f32 to vector<8x16xf32>
    %100 = arith.mulf %99, %98 : vector<8x16xf32>
    %c19 = arith.constant 19 : index
    %101 = memref.load %arg2[%c19] : memref<32xf32, #tpu.memory_space<smem>>
    %102 = vector.extract_strided_slice %48 {offsets = [0, 16], sizes = [8, 16], strides = [1, 1]} : vector<8x64xf32> to vector<8x16xf32>
    %103 = vector.broadcast %101 : f32 to vector<8x16xf32>
    %104 = arith.mulf %103, %102 : vector<8x16xf32>
    %105 = arith.addf %100, %104 : vector<8x16xf32>
    %c20 = arith.constant 20 : index
    %106 = memref.load %arg2[%c20] : memref<32xf32, #tpu.memory_space<smem>>
    %107 = vector.extract_strided_slice %48 {offsets = [0, 32], sizes = [8, 16], strides = [1, 1]} : vector<8x64xf32> to vector<8x16xf32>
    %108 = vector.broadcast %106 : f32 to vector<8x16xf32>
    %109 = arith.mulf %108, %107 : vector<8x16xf32>
    %110 = arith.addf %105, %109 : vector<8x16xf32>
    %c21 = arith.constant 21 : index
    %111 = memref.load %arg2[%c21] : memref<32xf32, #tpu.memory_space<smem>>
    %112 = vector.extract_strided_slice %48 {offsets = [0, 48], sizes = [8, 16], strides = [1, 1]} : vector<8x64xf32> to vector<8x16xf32>
    %113 = vector.broadcast %111 : f32 to vector<8x16xf32>
    %114 = arith.mulf %113, %112 : vector<8x16xf32>
    %115 = arith.addf %110, %114 : vector<8x16xf32>
    %c28 = arith.constant 28 : index
    %116 = memref.load %arg2[%c28] : memref<32xf32, #tpu.memory_space<smem>>
    %117 = vector.broadcast %116 : f32 to vector<8x16xf32>
    %118 = arith.addf %115, %117 : vector<8x16xf32>
    %cst_5 = arith.constant 0.000000e+00 : f32
    %119 = vector.broadcast %cst_5 : f32 to vector<8x16xf32>
    %120 = arith.maximumf %118, %119 : vector<8x16xf32>
    %c22 = arith.constant 22 : index
    %121 = memref.load %arg2[%c22] : memref<32xf32, #tpu.memory_space<smem>>
    %122 = vector.extract_strided_slice %48 {offsets = [0, 0], sizes = [8, 16], strides = [1, 1]} : vector<8x64xf32> to vector<8x16xf32>
    %123 = vector.broadcast %121 : f32 to vector<8x16xf32>
    %124 = arith.mulf %123, %122 : vector<8x16xf32>
    %c23 = arith.constant 23 : index
    %125 = memref.load %arg2[%c23] : memref<32xf32, #tpu.memory_space<smem>>
    %126 = vector.extract_strided_slice %48 {offsets = [0, 16], sizes = [8, 16], strides = [1, 1]} : vector<8x64xf32> to vector<8x16xf32>
    %127 = vector.broadcast %125 : f32 to vector<8x16xf32>
    %128 = arith.mulf %127, %126 : vector<8x16xf32>
    %129 = arith.addf %124, %128 : vector<8x16xf32>
    %c24 = arith.constant 24 : index
    %130 = memref.load %arg2[%c24] : memref<32xf32, #tpu.memory_space<smem>>
    %131 = vector.extract_strided_slice %48 {offsets = [0, 32], sizes = [8, 16], strides = [1, 1]} : vector<8x64xf32> to vector<8x16xf32>
    %132 = vector.broadcast %130 : f32 to vector<8x16xf32>
    %133 = arith.mulf %132, %131 : vector<8x16xf32>
    %134 = arith.addf %129, %133 : vector<8x16xf32>
    %c25 = arith.constant 25 : index
    %135 = memref.load %arg2[%c25] : memref<32xf32, #tpu.memory_space<smem>>
    %136 = vector.extract_strided_slice %48 {offsets = [0, 48], sizes = [8, 16], strides = [1, 1]} : vector<8x64xf32> to vector<8x16xf32>
    %137 = vector.broadcast %135 : f32 to vector<8x16xf32>
    %138 = arith.mulf %137, %136 : vector<8x16xf32>
    %139 = arith.addf %134, %138 : vector<8x16xf32>
    %c29 = arith.constant 29 : index
    %140 = memref.load %arg2[%c29] : memref<32xf32, #tpu.memory_space<smem>>
    %141 = vector.broadcast %140 : f32 to vector<8x16xf32>
    %142 = arith.addf %139, %141 : vector<8x16xf32>
    %cst_6 = arith.constant 0.000000e+00 : f32
    %143 = vector.broadcast %cst_6 : f32 to vector<8x16xf32>
    %144 = arith.maximumf %142, %143 : vector<8x16xf32>
    %145 = tpu.concatenate %72, %96, %120, %144 in 1 : vector<8x16xf32>, vector<8x16xf32>, vector<8x16xf32>, vector<8x16xf32> -> vector<8x64xf32>
    %c0_7 = arith.constant 0 : index
    %c0_8 = arith.constant 0 : index
    %146 = vector.load %arg3[%c0_7, %c0_8] : memref<64x10xf32, #tpu.memory_space<vmem>>, vector<64x10xf32>
    %cst_9 = arith.constant dense<0.000000e+00> : vector<8x10xf32>
    %147 = tpu.matmul %145, %146, %cst_9 {dimension_numbers = #tpu.dot_dimension_numbers<[1], [0], [0], [1], [0, 0, 1, 1], [], []>} : vector<8x64xf32>, vector<64x10xf32>, vector<8x10xf32> -> vector<8x10xf32>
    %c0_10 = arith.constant 0 : index
    %c0_11 = arith.constant 0 : index
    %148 = vector.load %arg4[%c0_10, %c0_11] : memref<1x10xf32, #tpu.memory_space<vmem>>, vector<1x10xf32>
    %149 = vector.broadcast %148 : vector<1x10xf32> to vector<8x10xf32>
    %150 = arith.addf %147, %149 : vector<8x10xf32>
    %cst_12 = arith.constant dense<0xFF800000> : vector<8xf32>
    %151 = vector.multi_reduction <maximumf>, %150, %cst_12 [1] : vector<8x10xf32> to vector<8xf32>
    %152 = vector.shape_cast %151 : vector<8xf32> to vector<8x1xf32>
    %153 = vector.broadcast %152 : vector<8x1xf32> to vector<8x10xf32>
    %154 = arith.subf %150, %153 : vector<8x10xf32>
    %155 = math.exp %154 : vector<8x10xf32>
    %cst_13 = arith.constant dense<0.000000e+00> : vector<8xf32>
    %156 = vector.multi_reduction <add>, %155, %cst_13 [1] : vector<8x10xf32> to vector<8xf32>
    %157 = vector.shape_cast %156 : vector<8xf32> to vector<8x1xf32>
    %158 = tpu.reciprocal %157 : vector<8x1xf32> -> vector<8x1xf32>
    %159 = vector.broadcast %158 : vector<8x1xf32> to vector<8x10xf32>
    %160 = arith.mulf %155, %159 : vector<8x10xf32>
    %c0_14 = arith.constant 0 : index
    %c0_15 = arith.constant 0 : index
    %161 = vector.load %arg5[%c0_14, %c0_15] : memref<8x10xf32, #tpu.memory_space<vmem>>, vector<8x10xf32>
    tpu.vector_store %arg5[%c0_14, %c0_15], %160 {strides = array<i32>} : memref<8x10xf32, #tpu.memory_space<vmem>>, vector<8x10xf32>,
    return
  }
  func.func @transform_0(%arg0: i32) -> (i32, i32) {
    %c0_i32 = arith.constant 0 : i32
    %c0_i32_0 = arith.constant 0 : i32
    return %arg0, %c0_i32 : i32, i32
  }
  func.func @transform_1(%arg0: i32) -> i32 {
    %c0_i32 = arith.constant 0 : i32
    %c0_i32_0 = arith.constant 0 : i32
    return %c0_i32 : i32
  }
  func.func @transform_2(%arg0: i32) -> (i32, i32) {
    %c0_i32 = arith.constant 0 : i32
    %c0_i32_0 = arith.constant 0 : i32
    %c0_i32_1 = arith.constant 0 : i32
    return %c0_i32, %c0_i32_0 : i32, i32
  }
  func.func @transform_3(%arg0: i32) -> (i32, i32) {
    %c0_i32 = arith.constant 0 : i32
    %c0_i32_0 = arith.constant 0 : i32
    %c0_i32_1 = arith.constant 0 : i32
    return %c0_i32, %c0_i32_0 : i32, i32
  }
  func.func @transform_4(%arg0: i32) -> (i32, i32) {
    %c0_i32 = arith.constant 0 : i32
    %c0_i32_0 = arith.constant 0 : i32
    return %arg0, %c0_i32 : i32, i32
  }
}

</mosaic_0001>

<bundles_post_ra>
// kernel: tpu_custom_call.1
= control target key start
LH: loop header
LB: loop body
LE: loop exit
PB: predicated region body
PF: predicated region fallthrough
CT: control target
= control target key end

     0   :  { %9 = vsyncpa [#allocation4], 0  ;;  %s515_s0 = inlined_call_operand.vmem [shape: f32[8,1024], index: 0, kind: input, shape index: {}]   ;;  %s516_s1 = inlined_call_operand.vmem [shape: f32[32], index: 1, kind: input, shape index: {}]   ;;  %s517_s2 = inlined_call_operand.vmem [shape: f32[64,10], index: 2, kind: input, shape index: {}]   ;;  %s518_s3 = inlined_call_operand.vmem [shape: f32[1,10], index: 3, kind: input, shape index: {}]   ;;  %s519_s4 = inlined_call_operand.hbm [shape: f32[8,10], index: 4, kind: output, shape index: {}]  }
   0x1   :  { %10 = vsyncpa [#allocation3], 0  ;;  %s18_s17 = sshll.u32 %s516_s1, 4  ;;  %s399_s18 = smov [#allocation2]   ;;  %s19_s17 = int_to_ptr.vmem [resolvable:$true] %s18_s17 }
   0x2   :  { %21 = dma.vmem_to_smem %s19_s17, 16, %s399_s18, [#allocation4]  }
   0x3   :  { %395 = dma.done.wait [#allocation4], 16  }
   0x4   :  { %396 = vsyncadd [#allocation4], 4294967280 }
   0x5   :  { %30 = sfence }
   0x6   :  { %s39_s19 = sld [smem:[#allocation2]]  ;;  %v31_v0 = vld [vmem:[%s515_s0] sm:$0xff]  ;;  %v32_v1 = vld [vmem:[%s515_s0 + $0x8] sm:$0xff]  ;;  %v33_v2 = vld [vmem:[%s515_s0 + $0x10] sm:$0xff]  ;;  %s400_s14 = smov 64   ;;  %vm230_vm0 = vcmask 130048  }
   0x7   :  { %s315_s20 = sld [smem:[#allocation2 + $0x1]]  ;;  %v34_v3 = vld [vmem:[%s515_s0 + $0x18] sm:$0xff]  ;;  %v35_v4 = vld [vmem:[%s515_s0 + $0x20] sm:$0xff]  ;;  %v36_v5 = vld [vmem:[%s515_s0 + $0x28] sm:$0xff]  ;;  %s401_s24 = smov 96   ;;  %vm232_vm1 = vcmask 261120  }
   0x8   :  { %s316_s21 = sld [smem:[#allocation2 + $0x2]]  ;;  %v37_v7 = vld [vmem:[%s515_s0 + $0x30] sm:$0xff]  ;;  %v38_v8 = vld [vmem:[%s515_s0 + $0x38] sm:$0xff]  ;;  %s402_s25 = smov 112   ;;  %vm234_vm2 = vcmask 392192   ;;  %vm248_vm3 = vcmask 523264  }
   0x9   :  { %s317_s22 = sld [smem:[#allocation2 + $0x3]]  ;;  %s403_s28 = smov 80   ;;  %vm272_vm4 = vcmask 80896  }
   0xa   :  { %s318_s30 = sld [smem:[#allocation2 + $0x4]]  ;;  %s404_s12 = smov 32  }
   0xb   :  { %s320_s13 = sld [smem:[#allocation2 + $0x6]] }
   0xc   :  { %v40_v6 = vstv %s39_s19  ;;  %s322_s0 = sld [smem:[#allocation2 + $0x8]] }
   0xd   :  { %v41_v9 = vmul.f32 %v40_v6, %v31_v0  ;;  %v42_v10 = vmul.f32 %v40_v6, %v32_v1  ;;  %v44_v11 = vstv %s315_s20  ;;  %s319_s15 = sld [smem:[#allocation2 + $0x5]] }
   0xe   :  { %v45_v12 = vmul.f32 %v44_v11, %v33_v2  ;;  %v46_v13 = vmul.f32 %v44_v11, %v34_v3  ;;  %v50_v14 = vstv %s316_s21  ;;  %s321_s16 = sld [smem:[#allocation2 + $0x7]] }
   0xf   :  { %v51_v15 = vmul.f32 %v50_v14, %v35_v4  ;;  %v52_v16 = vmul.f32 %v50_v14, %v36_v5  ;;  %v56_v17 = vstv %s317_s22  ;;  %s323_s17 = sld [smem:[#allocation2 + $0x9]] }
  0x10   :  { %v47_v18 = vadd.f32 %v45_v12, %v41_v9  ;;  %v48_v19 = vadd.f32 %v46_v13, %v42_v10  ;;  %v57_v20 = vmul.f32 %v56_v17, %v37_v7  ;;  %v58_v21 = vmul.f32 %v56_v17, %v38_v8  ;;  %s336_s18 = sld [smem:[#allocation2 + $0x14]] }
  0x11   :  { %v62_v24 = vstv %s318_s30  ;;  %v71_v28 = vstv %s320_s13  ;;  %s331_s19 = sld [smem:[#allocation2 + $0x10]]  ;;  %s405_s13 = smov 16  }
  0x12   :  { %v53_v22 = vadd.f32 %v51_v15, %v47_v18  ;;  %v54_v23 = vadd.f32 %v52_v16, %v48_v19  ;;  %v83_v33 = vstv %s322_s0  ;;  %s330_s20 = sld [smem:[#allocation2 + $0xf]]  ;;  %s406_s0 = smov 48  }
  0x13   :  { %v68_v35 = vstv %s319_s15  ;;  %s337_s21 = sld [smem:[#allocation2 + $0x15]] }
  0x14   :  { %v59_v25 = vadd.f32 %v57_v20, %v53_v22  ;;  %v60_v26 = vadd.f32 %v58_v21, %v54_v23  ;;  %v79_v38 = vstv %s321_s16  ;;  %s340_s22 = sld [smem:[#allocation2 + $0x17]] }
  0x15   :  { %v91_v42 = vstv %s323_s17  ;;  %s335_s23 = sld [smem:[#allocation2 + $0x13]] }
  0x16   :  { %v63_v27 = vadd.f32 %v62_v24, %v59_v25  ;;  %v64_v29 = vadd.f32 %v62_v24, %v60_v26  ;;  %v168_v46 = vstv %s336_s18  ;;  %s341_s26 = sld [smem:[#allocation2 + $0x18]] }
  0x17   :  { %v137_v47 = vstv %s331_s19  ;;  %s326_s27 = sld [smem:[#allocation2 + $0xc]] }
  0x18   :  { %v65_v30 = vmax.f32 %v63_v27, 0.0  ;;  %v66_v32 = vmax.f32 %v64_v29, 0.0  ;;  %v129_v48 = vstv %s330_s20  ;;  %s332_s1 = sld [smem:[#allocation2 + $0x11]] }
  0x19   :  { %v176_v53 = vstv %s337_s21  ;;  %s325_s29 = sld [smem:[#allocation2 + $0xb]] }
  0x1a   :  { %v72_v31 = vmul.f32 %v71_v28, %v65_v30  ;;  %v84_v34 = vmul.f32 %v83_v33, %v66_v32  ;;  %v69_v36 = vmul.f32 %v68_v35, %v65_v30  ;;  %v80_v40 = vmul.f32 %v79_v38, %v66_v32  ;;  %s342_s30 = sld [smem:[#allocation2 + $0x19]] }
  0x1b   :  { %v191_v54 = vstv %s340_s22  ;;  %v160_v55 = vstv %s335_s23  ;;  %s327_s5 = sld [smem:[#allocation2 + $0xd]] }
  0x1c   :  { %74 = vrot.lane.b32.xlu0 %v72_v31, %s400_s14  ;;  %v199_v59 = vstv %s341_s26  ;;  %s334_s6 = sld [smem:[#allocation2 + $0x12]] }
  0x1d   :  { %v106_v60 = vstv %s326_s27  ;;  %s329_s7 = sld [smem:[#allocation2 + $0xe]] }
  0x1e   :  { %v145_v61 = vstv %s332_s1  ;;  %s338_s8 = sld [smem:[#allocation2 + $0x1c]] }
  0x1f   :  { %v98_v1 = vstv %s325_s29  ;;  %s339_s9 = sld [smem:[#allocation2 + $0x16]] }
  0x20   :  { %v207_v2 = vstv %s342_s30  ;;  %s333_s10 = sld [smem:[#allocation2 + $0x1b]] }
  0x21   :  { %v114_v5 = vstv %s327_s5  ;;  %s343_s11 = sld [smem:[#allocation2 + $0x1d]] }
  0x22   :  { %v157_v10 = vstv %s334_s6  ;;  %s324_s29 = sld [smem:[#allocation2 + $0xa]] }
  0x23   :  { %v126_v11 = vstv %s329_s7  ;;  %s328_s30 = sld [smem:[#allocation2 + $0x1a]] }
  0x24   :  { %86 = vrot.lane.b32.xlu0 %v84_v34, %s400_s14  ;;  %v184_v20 = vstv %s338_s8 }
  0x25   :  { %v188_v24 = vstv %s339_s9  ;;  %s305_s9 = sshll.u32 %s519_s4, 4  ;;  %s306_s9 = int_to_ptr.hbm [resolvable:$true] %s305_s9 }
  0x26   :  { %v153_v25 = vstv %s333_s10 }
  0x27   :  { %v215_v35 = vstv %s343_s11 }
  0x8e   :  { %v75_v37 = vpop.permute.xlu0 %74 }
  0x8f   :  { %v77_v39 = vadd.f32 %v75_v37, %v69_v36 }
  0x91   :  { %v81_v41 = vadd.f32 %v80_v40, %v77_v39  ;;  %v243_v40 = vld [vmem:[%s517_s2 + $0x38] sm:$0xff] }
  0x92   :  { %260 = vmatpush.msra.mxu0 %v243_v40 }
  0x96   :  { %v87_v43 = vpop.permute.xlu0 %86 }
  0x97   :  { %v89_v44 = vadd.f32 %v87_v43, %v81_v41  ;;  %v242_v41 = vld [vmem:[%s517_s2 + $0x30] sm:$0xff]  ;;  %v240_v43 = vld [vmem:[%s517_s2 + $0x20] sm:$0xff] }
  0x98   :  { %261 = vmatpush.msra.mxu0 %v242_v41 }
  0x99   :  { %v92_v45 = vadd.f32 %v91_v42, %v89_v44  ;;  %v241_v42 = vld [vmem:[%s517_s2 + $0x28] sm:$0xff]  ;;  %v239_v44 = vld [vmem:[%s517_s2 + $0x18] sm:$0xff] }
  0x9a   :  { %262 = vmatpush.msra.mxu0 %v241_v42 }
  0x9b   :  { %v460_v49 = vmax.f32 %v92_v45, 0.0  ;;  %v238_v45 = vld [vmem:[%s517_s2 + $0x10] sm:$0xff] }
  0x9c   :  { %263 = vmatpush.msra.mxu0 %v240_v43 }
  0x9d   :  { %v169_v50 = vmul.f32 %v168_v46, %v460_v49  ;;  %v138_v51 = vmul.f32 %v137_v47, %v460_v49  ;;  %v130_v52 = vmul.f32 %v129_v48, %v460_v49  ;;  %v177_v56 = vmul.f32 %v176_v53, %v460_v49  ;;  %v237_v46 = vld [vmem:[%s517_s2 + $0x8] sm:$0xff]  ;;  %v236_v47 = vld [vmem:[%s517_s2] sm:$0xff] }
  0x9e   :  { %v192_v57 = vmul.f32 %v191_v54, %v460_v49  ;;  %v161_v58 = vmul.f32 %v160_v55, %v460_v49  ;;  %v200_v62 = vmul.f32 %v199_v59, %v460_v49  ;;  %v107_v63 = vmul.f32 %v106_v60, %v460_v49  ;;  %264 = vmatpush.msra.mxu0 %v239_v44 }
  0x9f   :  { %171 = vrot.lane.b32.xlu0 %v169_v50, %s401_s24  ;;  %140 = vrot.lane.b32.xlu2 %v138_v51, %s401_s24  ;;  %v146_v0 = vmul.f32 %v145_v61, %v460_v49  ;;  %v99_v3 = vmul.f32 %v98_v1, %v460_v49  ;;  %v208_v4 = vmul.f32 %v207_v2, %v460_v49  ;;  %v95_v48 = vstv %s324_s29 }
  0xa0   :  { %132 = vrot.lane.b32.xlu1 %v130_v52, %s402_s25  ;;  %v115_v6 = vmul.f32 %v114_v5, %v460_v49  ;;  %v158_v12 = vmul.f32 %v157_v10, %v460_v49  ;;  %v127_v14 = vmul.f32 %v126_v11, %v460_v49  ;;  %v189_v29 = vmul.f32 %v188_v24, %v460_v49 }
  0xa1   :  { %265 = vmatpush.msra.mxu0 %v238_v45  ;;  %v96_v51 = vmul.f32 %v95_v48, %v460_v49  ;;  %v354_v49 = vld [vmem:[%s518_s3] ss:$0 sm:$0xff]  ;;  %s407_s3 = smov [#allocation5]  }
  0xa2   :  { %s303_s6 = sshll.u32 %s407_s3, 4  ;;  %s304_s6 = int_to_ptr.vmem [resolvable:$true] %s303_s6 }
  0xa3   :  { %266 = vmatpush.msra.mxu0 %v237_v46 }
  0xa5   :  { %267 = vmatpush.msra.mxu0 %v236_v47 }
  0xa7   :  { %179 = vrot.lane.b32.xlu0 %v177_v56, %s403_s28  ;;  %194 = vrot.lane.b32.xlu2 %v192_v57, %s402_s25  ;;  %v122_v57 = vstv %s328_s30 }
  0xa8   :  { %163 = vrot.lane.b32.xlu1 %v161_v58, %s402_s25 }
  0xaf   :  { %202 = vrot.lane.b32.xlu2 %v200_v62, %s401_s24  ;;  %109 = vrot.lane.b32.xlu0 %v107_v63, %s401_s24 }
  0xb0   :  { %148 = vrot.lane.b32.xlu1 %v146_v0, %s403_s28 }
  0xb7   :  { %101 = vrot.lane.b32.xlu2 %v99_v3, %s402_s25 }
  0xb8   :  { %210 = vrot.lane.b32.xlu1 %v208_v4, %s403_s28 }
  0xc0   :  { %117 = vrot.lane.b32.xlu1 %v115_v6, %s403_s28 }
  0xf9   :  { %v141_v7 = vpop.permute.xlu2 %140 }
 0x101   :  { %v195_v16 = vpop.permute.xlu2 %194 }
 0x102   :  { %v197_v32 = vadd.f32 %v195_v16, %v189_v29 }
 0x109   :  { %v203_v31 = vpop.permute.xlu2 %202 }
 0x10a   :  { %v205_v34 = vadd.f32 %v203_v31, %v197_v32 }
 0x111   :  { %v172_v9 = vpop.permute.xlu0 %171  ;;  %v102_v50 = vpop.permute.xlu2 %101 }
 0x112   :  { %v133_v8 = vpop.permute.xlu1 %132  ;;  %v104_v53 = vadd.f32 %v102_v50, %v96_v51 }
 0x113   :  { %v135_v17 = vadd.f32 %v133_v8, %v127_v14 }
 0x115   :  { %v143_v22 = vadd.f32 %v141_v7, %v135_v17 }
 0x119   :  { %v180_v19 = vpop.permute.xlu0 %179 }
 0x11a   :  { %v164_v13 = vpop.permute.xlu1 %163 }
 0x11b   :  { %v166_v15 = vadd.f32 %v164_v13, %v158_v12 }
 0x11d   :  { %v174_v18 = vadd.f32 %v172_v9, %v166_v15 }
 0x11f   :  { %v182_v21 = vadd.f32 %v180_v19, %v174_v18 }
 0x121   :  { %v185_v23 = vadd.f32 %v184_v20, %v182_v21  ;;  %v110_v52 = vpop.permute.xlu0 %109 }
 0x122   :  { %v149_v26 = vpop.permute.xlu1 %148  ;;  %v112_v55 = vadd.f32 %v110_v52, %v104_v53 }
 0x123   :  { %v151_v27 = vadd.f32 %v149_v26, %v143_v22  ;;  %v186_v28 = vmax.f32 %v185_v23, 0.0 }
 0x125   :  { %v154_v30 = vadd.f32 %v153_v25, %v151_v27  ;;  %223 = vrot.lane.b32.xlu0 %v186_v28, %s404_s12 }
 0x127   :  { %v155_v33 = vmax.f32 %v154_v30, 0.0 }
 0x129   :  { %219 = vrot.lane.b32.xlu2 %v155_v33, %s405_s13 }
 0x12a   :  { %v211_v36 = vpop.permute.xlu1 %210 }
 0x12b   :  { %v213_v37 = vadd.f32 %v211_v36, %v205_v34 }
 0x12d   :  { %v216_v38 = vadd.f32 %v215_v35, %v213_v37 }
 0x12f   :  { %v217_v39 = vmax.f32 %v216_v38, 0.0 }
 0x131   :  { %227 = vrot.lane.b32.xlu1 %v217_v39, %s406_s0 }
 0x132   :  { %v118_v54 = vpop.permute.xlu1 %117 }
 0x133   :  { %v120_v56 = vadd.f32 %v118_v54, %v112_v55 }
 0x135   :  { %v123_v58 = vadd.f32 %v122_v57, %v120_v56 }
 0x137   :  { %v124_v60 = vmax.f32 %v123_v58, 0.0 }
 0x183   :  { %v220_v59 = vpop.permute.xlu2 %219 }
 0x184   :  { %v231_v62 = vsel %vm230_vm0, %v124_v60, %v220_v59 }
 0x197   :  { %v224_v61 = vpop.permute.xlu0 %223 }
 0x198   :  { %v233_v63 = vsel %vm232_vm1, %v231_v62, %v224_v61 }
 0x1a3   :  { %v228_v0 = vpop.permute.xlu1 %227 }
 0x1a4   :  { %v235_v1 = vsel %vm234_vm2, %v233_v63, %v228_v0 }
 0x1a5   :  { %344 = vmatmul.msk.f32.vlgmr.msra.gmra.mxu0 %vm248_vm3, %v235_v1 }
 0x222   :  { %v269_v2 = vpop.f32.mrf.mxu0 }
 0x223   :  { %v270_v3 = vadd.f32 %v354_v49, %v269_v2 }
 0x225   :  { %v273_v4 = vsel %vm272_vm4, %v270_v3, -inf }
 0x226   :  { %274 = vmax.xlane.f32.xlu2 %v273_v4 }
 0x299   :  { %v275_v5 = vpop.xlane.xlu2 %274 }
 0x29a   :  { %v276_v6 = vsub.f32 %v270_v3, %v275_v5 }
 0x29c   :  { %v277_v7 = vmul.f32 1.442695, %v276_v6 }
 0x29e   :  { %355 = vpow2.f32 %v277_v7 }
 0x2a4   :  { %v356_v8 = vpop.eup %355 }
 0x2a5   :  { %v279_v9 = vsel %vm272_vm4, %v356_v8, 0.0 }
 0x2a6   :  { %280 = vadd.xlane.f32.xlu0 %v279_v9 }
 0x319   :  { %v281_v10 = vpop.xlane.xlu0 %280 }
 0x31a   :  { %357 = vrcp.f32 %v281_v10  ;;  %v293_v14 = vand.u32 2147483648, %v281_v10  ;;  %v291_v16 = vand.u32 2147483647, %v281_v10  ;;  %vm287_vm6 = vweird.f32 %v281_v10 }
 0x31c   :  { %v294_v18 = vor.u32 1.1754944e-38, %v293_v14  ;;  %vm292_vm8 = vcmp.eq.f32.partialorder %v291_v16, 8.507059e+37 }
 0x320   :  { %v358_v11 = vpop.eup %357 }
 0x321   :  { %v283_v12 = vmul.f32 %v358_v11, %v281_v10  ;;  %vm288_vm5 = vweird.f32 %v358_v11 }
 0x322   :  { %vm289_vm7 = vmor %vm287_vm6, %vm288_vm5 }
 0x323   :  { %v284_v13 = vsub.f32 1.0, %v283_v12 }
 0x325   :  { %v285_v15 = vmul.f32 %v358_v11, %v284_v13 }
 0x327   :  { %v286_v17 = vadd.f32 %v358_v11, %v285_v15 }
 0x329   :  { %v290_v19 = vsel %vm289_vm7, %v358_v11, %v286_v17 }
 0x32a   :  { %v295_v20 = vsel %vm292_vm8, %v294_v18, %v290_v19 }
 0x32b   :  { %v296_v21 = vmul.f32 %v356_v8, %v295_v20 }
 0x32d   :  { %297 = vst.msk [vmem:[#allocation5] sm:$0xff] %vm272_vm4, %v296_v21 }
 0x32e   :  { %308 = dma.vmem_to_hbm [thread:$0]  %s304_s6, 128, %s306_s9, [#allocation3]  }
 0x32f   :  { %397 = dma.done.wait [#allocation3], 128  }
 0x330   :  { %398 = vsyncadd [#allocation3], 4294967168 }
 0x331   :  { %313 = vsyncpa [#allocation3], 1 }
 0x332   :  { %314 = vsyncpa [#allocation4], 1 }

</bundles_post_ra>
